<compile_context>
chip_gen: v7x
topology: tpu7x:2x2x1
jax: 0.10.0
libtpu: 0.0.40
codegen_flags: <defaults>
</compile_context>

<pallas_src>
import functools
import math

import jax
import jax.numpy as jnp
from jax import lax
from jax.experimental import pallas as pl
from jax.experimental.pallas import tpu as pltpu


def _round_up(x, m):
    return ((x + m - 1) // m) * m


def _maybe_pad2(x, rows, cols):
    r, c = x.shape
    if r == rows and c == cols:
        return x
    return jnp.pad(x, ((0, rows - r), (0, cols - c)))


def _tpu_info():
    """Returns (is_v5e, physical_vmem_bytes) with conservative fallbacks."""
    kind = ""
    try:
        kind = jax.devices()[0].device_kind.lower()
    except Exception:
        pass
    is_v5e = ("v5" in kind) and (("lite" in kind) or ("v5e" in kind))
    vmem_cap = 64 * 1024 * 1024  # conservative fallback (v7x per-TC size)
    try:
        vmem_cap = int(pltpu.get_tpu_info().vmem_capacity_bytes)
    except Exception:
        pass
    return is_v5e, vmem_cap


# ---------------------------------------------------------------------------
# Kernel bodies
# ---------------------------------------------------------------------------

def _attention_tile(q, kt_ref, v_ref, wq_ref, bq_ref, *, inv_scale, nk_valid,
                    compute_dtype):
    """One Q-row tile: Q projection + softmax(QK^T/sqrt(D)) @ V_ (all f32 acc)."""
    cd = compute_dtype
    # Q projection (MXU, f32 accumulation) + f32 bias; fold 1/sqrt(D) into Q_.
    q_p = jnp.dot(q, wq_ref[...], preferred_element_type=jnp.float32)
    q_p = q_p + bq_ref[...]
    q_s = (q_p * inv_scale).astype(cd)

    # logits = Q_ @ K_^T ; K_ is already projected AND transposed to (D, Nk).
    logits = jnp.dot(q_s, kt_ref[...], preferred_element_type=jnp.float32)

    # Mask zero-padded K columns so they vanish from the softmax.
    if nk_valid is not None:
        col = lax.broadcasted_iota(jnp.int32, logits.shape, 1)
        logits = jnp.where(col < nk_valid, logits, jnp.float32(-1e30))

    # Numerically stable softmax over the K axis (PyTorch dim=1), in f32.
    m = jnp.max(logits, axis=-1, keepdims=True)
    e = jnp.exp(logits - m)
    denom = jnp.sum(e, axis=-1, keepdims=True)
    attn = e * pl.reciprocal(denom, approx=True)  # EUP vrcp: off the VALU path

    out = jnp.dot(attn.astype(cd), v_ref[...],
                  preferred_element_type=jnp.float32)
    return out, attn


def _kernel_with_attn(q_ref, kt_ref, v_ref, wq_ref, bq_ref, out_ref, attn_ref,
                      *, inv_scale, nk_valid, compute_dtype):
    out, attn = _attention_tile(q_ref[...], kt_ref, v_ref, wq_ref, bq_ref,
                                inv_scale=inv_scale, nk_valid=nk_valid,
                                compute_dtype=compute_dtype)
    out_ref[...] = out.astype(out_ref.dtype)
    attn_ref[...] = attn.astype(attn_ref.dtype)


def _kernel_out_only(q_ref, kt_ref, v_ref, wq_ref, bq_ref, out_ref,
                     *, inv_scale, nk_valid, compute_dtype):
    out, _ = _attention_tile(q_ref[...], kt_ref, v_ref, wq_ref, bq_ref,
                             inv_scale=inv_scale, nk_valid=nk_valid,
                             compute_dtype=compute_dtype)
    out_ref[...] = out.astype(out_ref.dtype)


# ---------------------------------------------------------------------------
# BlockSpecs
# ---------------------------------------------------------------------------

def _in_specs(tq, d_pad, nk_pad, single_buffer_resident):
    """Q tile is pipelined; K_^T / V_ / W_q / b_q are grid-invariant residents."""
    def resident(shape):
        if single_buffer_resident:
            return pl.BlockSpec(shape, lambda *_: (0,) * len(shape),
                                pipeline_mode=pl.Buffered(1))
        return pl.BlockSpec(shape, lambda *_: (0,) * len(shape))

    return [
        pl.BlockSpec((tq, d_pad), lambda i: (i, 0)),  # Q tile (double-buffered)
        resident((d_pad, nk_pad)),                    # K_^T  (resident)
        resident((nk_pad, d_pad)),                    # V_    (resident)
        resident((d_pad, d_pad)),                     # W_q   (resident)
        resident((1, d_pad)),                         # b_q   (resident, f32)
    ]


# ---------------------------------------------------------------------------
# Wrapper
# ---------------------------------------------------------------------------

def prepare_params(params, embed_dim, compute_dtype=jnp.bfloat16):
    """One-time pad/cast of the Q-projection weights (avoids per-call padding)."""
    d_pad = _round_up(embed_dim, 128)
    prepared = dict(params)
    prepared["W_q_pad"] = _maybe_pad2(params["W_q"].astype(jnp.float32),
                                      d_pad, d_pad).astype(compute_dtype)
    prepared["b_q_pad"] = _maybe_pad2(
        params["b_q"].reshape(1, embed_dim).astype(jnp.float32), 1, d_pad)
    return prepared


def cd_user_attention(Q, K, V, params, *, return_attn_weights=True,
                      compute_dtype=jnp.bfloat16, attn_dtype=jnp.float32,
                      out_dtype=jnp.float32):
    """Pallas forward of CDUserAttention. Q: (Nq, D); K, V: (Nk, D)."""
    nq, d = Q.shape
    nk, _ = K.shape
    inv_scale = 1.0 / math.sqrt(d)
    f32 = jnp.float32
    cd = jnp.dtype(compute_dtype)

    d_pad = _round_up(d, 128)
    nk_pad = _round_up(nk, 128)

    # --- generation-aware Q tile size ------------------------------------
    is_v5e, vmem_cap = _tpu_info()
    max_tq = 128 if is_v5e else 256            # v5e MXU is 4x128x128
    if nq > 128:
        # Keep grid >= 2 so both v7x TensorCores get work (harmless on 1-TC chips).
        tq = min(max_tq, _round_up(pl.cdiv(nq, 2), 8))
    else:
        tq = _round_up(nq, 8)
    grid = (pl.cdiv(nq, tq),)
    nq_pad = grid[0] * tq

    # --- hoisted K/V projections (once, in the wrapper, f32) --------------
    k_p = jnp.dot(K.astype(f32), params["W_k"].astype(f32),
                  preferred_element_type=f32) + params["b_k"].reshape(1, d).astype(f32)
    v_p = jnp.dot(V.astype(f32), params["W_v"].astype(f32),
                  preferred_element_type=f32) + params["b_v"].reshape(1, d).astype(f32)

    # Pre-transpose K_ so the kernel contracts on its leading dim.
    kt_pad = _maybe_pad2(k_p.T, d_pad, nk_pad).astype(cd)
    v_pad = _maybe_pad2(v_p, nk_pad, d_pad).astype(cd)
    q_pad = _maybe_pad2(Q.astype(f32), nq_pad, d_pad).astype(cd)

    wq_pad = params.get("W_q_pad")
    if wq_pad is None or wq_pad.dtype != cd or wq_pad.shape != (d_pad, d_pad):
        wq_pad = _maybe_pad2(params["W_q"].astype(f32), d_pad, d_pad).astype(cd)
    bq_pad = params.get("b_q_pad")
    if bq_pad is None or bq_pad.shape != (1, d_pad):
        bq_pad = _maybe_pad2(params["b_q"].reshape(1, d).astype(f32), 1, d_pad)

    nk_valid = None if nk_pad == nk else nk

    # --- footprint-derived scoped-VMEM budget (clamped to 60% of physical) --
    cb = cd.itemsize
    resident_bytes = (2 * nk_pad * d_pad + d_pad * d_pad) * cb + d_pad * 4
    io_bytes = 2 * tq * d_pad * cb + 2 * tq * d_pad * jnp.dtype(out_dtype).itemsize
    if return_attn_weights:
        io_bytes += 2 * tq * nk_pad * jnp.dtype(attn_dtype).itemsize
    temp_bytes = 4 * tq * nk_pad * 4 + 4 * tq * d_pad * 4  # logits/exp/q_p temps
    budget = resident_bytes + io_bytes + temp_bytes + (8 << 20)  # Mosaic scratch headroom
    upper = max(int(vmem_cap * 0.6), 32 << 20)
    vmem_limit = int(min(max(budget, 32 << 20), upper))

    compiler_params = pltpu.CompilerParams(
        dimension_semantics=("parallel",),     # shard Q tiles across TCs
        vmem_limit_bytes=vmem_limit,
    )

    statics = dict(inv_scale=inv_scale, nk_valid=nk_valid, compute_dtype=cd)
    inputs = (q_pad, kt_pad, v_pad, wq_pad, bq_pad)

    if return_attn_weights:
        kernel_fn = functools.partial(_kernel_with_attn, **statics)
        out_shape = (jax.ShapeDtypeStruct((nq_pad, d_pad), out_dtype),
                     jax.ShapeDtypeStruct((nq_pad, nk_pad), attn_dtype))
        out_specs = (pl.BlockSpec((tq, d_pad), lambda i: (i, 0)),
                     pl.BlockSpec((tq, nk_pad), lambda i: (i, 0)))
    else:
        kernel_fn = functools.partial(_kernel_out_only, **statics)
        out_shape = jax.ShapeDtypeStruct((nq_pad, d_pad), out_dtype)
        out_specs = pl.BlockSpec((tq, d_pad), lambda i: (i, 0))

    result = None
    last_err = None
    # Prefer single-buffering the grid-invariant inputs; fall back to default
    # double-buffering if this jax build rejects Buffered(1).
    for single_buf in (True, False):
        try:
            in_specs = _in_specs(tq, d_pad, nk_pad, single_buf)
            result = pl.pallas_call(
                kernel_fn,
                grid=grid,
                out_shape=out_shape,
                in_specs=in_specs,
                out_specs=out_specs,
                compiler_params=compiler_params,
            )(*inputs)
            break
        except Exception as e:  # noqa: BLE001 - retry with default buffering
            last_err = e
    if result is None:
        raise last_err

    if return_attn_weights:
        out_p, attn_p = result
        return out_p[:nq, :d], attn_p[:nq, :nk]
    return result[:nq, :d]


# ---------------------------------------------------------------------------
# Params / reference / tests
# ---------------------------------------------------------------------------

def init_params(key, embed_dim):
    """Deterministic synthetic params (shapes match nn.Linear(embed_dim, embed_dim))."""
    ks = jax.random.split(key, 6)
    bound = 1.0 / math.sqrt(embed_dim)

    def lin(kw, kb):
        W = jax.random.uniform(kw, (embed_dim, embed_dim), jnp.float32, -bound, bound)
        b = jax.random.uniform(kb, (1, embed_dim), jnp.float32, -bound, bound)
        return W, b

    W_q, b_q = lin(ks[0], ks[1])
    W_k, b_k = lin(ks[2], ks[3])
    W_v, b_v = lin(ks[4], ks[5])
    return {"W_q": W_q, "b_q": b_q, "W_k": W_k, "b_k": b_k,
            "W_v": W_v, "b_v": b_v}


def reference(Q, K, V, params):
    """Pure-JAX reference mirroring the PyTorch forward."""
    D = Q.shape[-1]
    q_p = Q @ params["W_q"] + params["b_q"]
    k_p = K @ params["W_k"] + params["b_k"]
    v_p = V @ params["W_v"] + params["b_v"]
    logits = (q_p @ k_p.T) / math.sqrt(D)
    attn = jax.nn.softmax(logits, axis=1)
    return attn @ v_p, attn


if __name__ == "__main__":
    key = jax.random.PRNGKey(0)

    def make_case(k, nq, nk, d):
        kq, kk, kv, kp = jax.random.split(k, 4)
        Q = jax.random.normal(kq, (nq, d), jnp.float32)
        K = jax.random.normal(kk, (nk, d), jnp.float32)
        V = jax.random.normal(kv, (nk, d), jnp.float32)
        return Q, K, V, init_params(kp, d)

    k1, k2, k3 = jax.random.split(key, 3)

    # Case 1: lane-aligned shapes, default bf16 MXU operands, prepared params.
    Q, K, V, params = make_case(k1, 16, 128, 128)
    prepped = prepare_params(params, 128, compute_dtype=jnp.bfloat16)
    out, attn = jax.block_until_ready(cd_user_attention(Q, K, V, prepped))
    ref_out, ref_attn = reference(Q, K, V, params)
    assert jnp.allclose(out, ref_out, atol=5e-2, rtol=5e-2), "out mismatch (bf16)"
    assert jnp.allclose(attn, ref_attn, atol=5e-2, rtol=5e-2), "attn mismatch (bf16)"
    assert jnp.allclose(jnp.sum(attn, axis=1), 1.0, atol=1e-2), "softmax rows must sum to ~1"

    # Case 2: small unaligned shapes (exercises Nq/Nk/D padding + K-col masking), f32.
    Q2, K2, V2, params2 = make_case(k2, 10, 8, 32)
    out2, attn2 = jax.block_until_ready(
        cd_user_attention(Q2, K2, V2, params2, compute_dtype=jnp.float32))
    ref_out2, ref_attn2 = reference(Q2, K2, V2, params2)
    assert jnp.allclose(out2, ref_out2, atol=1e-2, rtol=1e-2), "out mismatch (padded f32)"
    assert jnp.allclose(attn2, ref_attn2, atol=1e-2, rtol=1e-2), "attn mismatch (padded f32)"
    assert jnp.allclose(jnp.sum(attn2, axis=1), 1.0, atol=1e-2), "softmax rows must sum to ~1"

    # Case 3: nq > 128 exercises the multi-tile (grid >= 2) path, f32.
    Q3, K3, V3, params3 = make_case(k3, 300, 200, 64)
    out3, attn3 = jax.block_until_ready(
        cd_user_attention(Q3, K3, V3, params3, compute_dtype=jnp.float32))
    ref_out3, ref_attn3 = reference(Q3, K3, V3, params3)
    assert jnp.allclose(out3, ref_out3, atol=1e-2, rtol=1e-2), "out mismatch (multi-tile)"
    assert jnp.allclose(attn3, ref_attn3, atol=1e-2, rtol=1e-2), "attn mismatch (multi-tile)"

    # Out-only fast path (skips the attn_weights HBM writeback).
    out_only = jax.block_until_ready(
        cd_user_attention(Q, K, V, prepped, return_attn_weights=False))
    assert jnp.allclose(out_only, ref_out, atol=5e-2, rtol=5e-2), "out-only mismatch"

    print("KERNEL_OK")
</pallas_src>

<mosaic_0001>
module attributes {stable_mosaic.version = 11 : i64} {
  func.func @_kernel_with_attn(%arg0: i32, %arg1: memref<16x128xbf16, #tpu.memory_space<vmem>>, %arg2: memref<128x128xbf16, #tpu.memory_space<vmem>>, %arg3: memref<128x128xbf16, #tpu.memory_space<vmem>>, %arg4: memref<128x128xbf16, #tpu.memory_space<vmem>>, %arg5: memref<1x128xf32, #tpu.memory_space<vmem>>, %arg6: memref<16x128xf32, #tpu.memory_space<vmem>>, %arg7: memref<16x128xf32, #tpu.memory_space<vmem>>) attributes {dimension_semantics = [#tpu.dimension_semantics<parallel>], iteration_bounds = array<i64: 1>, scalar_prefetch = 0 : i64, scratch_operands = 0 : i64, tpu.core_type = #tpu.core_type<tc>, window_params = [{transform_indices = @transform_0, window_bounds = array<i64: 16, 128>}, {pipeline_mode = #tpu.pipeline_mode<synchronous>, transform_indices = @transform_1, window_bounds = array<i64: 128, 128>}, {pipeline_mode = #tpu.pipeline_mode<synchronous>, transform_indices = @transform_2, window_bounds = array<i64: 128, 128>}, {pipeline_mode = #tpu.pipeline_mode<synchronous>, transform_indices = @transform_3, window_bounds = array<i64: 128, 128>}, {pipeline_mode = #tpu.pipeline_mode<synchronous>, transform_indices = @transform_4, window_bounds = array<i64: 1, 128>}, {transform_indices = @transform_5, window_bounds = array<i64: 16, 128>}, {transform_indices = @transform_6, window_bounds = array<i64: 16, 128>}]} {
    %c0 = arith.constant 0 : index
    %c0_0 = arith.constant 0 : index
    %0 = vector.load %arg1[%c0, %c0_0] : memref<16x128xbf16, #tpu.memory_space<vmem>>, vector<16x128xbf16>
    %c0_1 = arith.constant 0 : index
    %c0_2 = arith.constant 0 : index
    %1 = vector.load %arg4[%c0_1, %c0_2] : memref<128x128xbf16, #tpu.memory_space<vmem>>, vector<128x128xbf16>
    %cst = arith.constant dense<0.000000e+00> : vector<16x128xf32>
    %2 = tpu.matmul %0, %1, %cst {dimension_numbers = #tpu.dot_dimension_numbers<[1], [0], [0], [1], [0, 0, 1, 1], [], []>} : vector<16x128xbf16>, vector<128x128xbf16>, vector<16x128xf32> -> vector<16x128xf32>
    %c0_3 = arith.constant 0 : index
    %c0_4 = arith.constant 0 : index
    %3 = vector.load %arg5[%c0_3, %c0_4] : memref<1x128xf32, #tpu.memory_space<vmem>>, vector<1x128xf32>
    %4 = vector.broadcast %3 : vector<1x128xf32> to vector<16x128xf32>
    %5 = arith.addf %2, %4 : vector<16x128xf32>
    %cst_5 = arith.constant 0.0883883461 : f32
    %6 = vector.broadcast %cst_5 : f32 to vector<16x128xf32>
    %7 = arith.mulf %5, %6 : vector<16x128xf32>
    %8 = arith.truncf %7 : vector<16x128xf32> to vector<16x128xbf16>
    %c0_6 = arith.constant 0 : index
    %c0_7 = arith.constant 0 : index
    %9 = vector.load %arg2[%c0_6, %c0_7] : memref<128x128xbf16, #tpu.memory_space<vmem>>, vector<128x128xbf16>
    %cst_8 = arith.constant dense<0.000000e+00> : vector<16x128xf32>
    %10 = tpu.matmul %8, %9, %cst_8 {dimension_numbers = #tpu.dot_dimension_numbers<[1], [0], [0], [1], [0, 0, 1, 1], [], []>} : vector<16x128xbf16>, vector<128x128xbf16>, vector<16x128xf32> -> vector<16x128xf32>
    %cst_9 = arith.constant dense<0xFF800000> : vector<16xf32>
    %11 = vector.multi_reduction <maximumf>, %10, %cst_9 [1] : vector<16x128xf32> to vector<16xf32>
    %12 = vector.shape_cast %11 : vector<16xf32> to vector<16x1xf32>
    %13 = vector.broadcast %12 : vector<16x1xf32> to vector<16x128xf32>
    %14 = arith.subf %10, %13 : vector<16x128xf32>
    %15 = math.exp %14 : vector<16x128xf32>
    %cst_10 = arith.constant dense<0.000000e+00> : vector<16xf32>
    %16 = vector.multi_reduction <add>, %15, %cst_10 [1] : vector<16x128xf32> to vector<16xf32>
    %17 = vector.shape_cast %16 : vector<16xf32> to vector<16x1xf32>
    %18 = tpu.reciprocal %17 {approx = true} : vector<16x1xf32> -> vector<16x1xf32>
    %19 = vector.broadcast %18 : vector<16x1xf32> to vector<16x128xf32>
    %20 = arith.mulf %15, %19 : vector<16x128xf32>
    %21 = arith.truncf %20 : vector<16x128xf32> to vector<16x128xbf16>
    %c0_11 = arith.constant 0 : index
    %c0_12 = arith.constant 0 : index
    %22 = vector.load %arg3[%c0_11, %c0_12] : memref<128x128xbf16, #tpu.memory_space<vmem>>, vector<128x128xbf16>
    %cst_13 = arith.constant dense<0.000000e+00> : vector<16x128xf32>
    %23 = tpu.matmul %21, %22, %cst_13 {dimension_numbers = #tpu.dot_dimension_numbers<[1], [0], [0], [1], [0, 0, 1, 1], [], []>} : vector<16x128xbf16>, vector<128x128xbf16>, vector<16x128xf32> -> vector<16x128xf32>
    %c0_14 = arith.constant 0 : index
    %c0_15 = arith.constant 0 : index
    %24 = vector.load %arg6[%c0_14, %c0_15] : memref<16x128xf32, #tpu.memory_space<vmem>>, vector<16x128xf32>
    tpu.vector_store %arg6[%c0_14, %c0_15], %23 {strides = array<i32>} : memref<16x128xf32, #tpu.memory_space<vmem>>, vector<16x128xf32>,
    %c0_16 = arith.constant 0 : index
    %c0_17 = arith.constant 0 : index
    %25 = vector.load %arg7[%c0_16, %c0_17] : memref<16x128xf32, #tpu.memory_space<vmem>>, vector<16x128xf32>
    tpu.vector_store %arg7[%c0_16, %c0_17], %20 {strides = array<i32>} : memref<16x128xf32, #tpu.memory_space<vmem>>, vector<16x128xf32>,
    return
  }
  func.func @transform_0(%arg0: i32) -> (i32, i32) {
    %c0_i32 = arith.constant 0 : i32
    %c0_i32_0 = arith.constant 0 : i32
    return %arg0, %c0_i32 : i32, i32
  }
  func.func @transform_1(%arg0: i32) -> (i32, i32) {
    %c0_i32 = arith.constant 0 : i32
    %c0_i32_0 = arith.constant 0 : i32
    %c0_i32_1 = arith.constant 0 : i32
    return %c0_i32, %c0_i32_0 : i32, i32
  }
  func.func @transform_2(%arg0: i32) -> (i32, i32) {
    %c0_i32 = arith.constant 0 : i32
    %c0_i32_0 = arith.constant 0 : i32
    %c0_i32_1 = arith.constant 0 : i32
    return %c0_i32, %c0_i32_0 : i32, i32
  }
  func.func @transform_3(%arg0: i32) -> (i32, i32) {
    %c0_i32 = arith.constant 0 : i32
    %c0_i32_0 = arith.constant 0 : i32
    %c0_i32_1 = arith.constant 0 : i32
    return %c0_i32, %c0_i32_0 : i32, i32
  }
  func.func @transform_4(%arg0: i32) -> (i32, i32) {
    %c0_i32 = arith.constant 0 : i32
    %c0_i32_0 = arith.constant 0 : i32
    %c0_i32_1 = arith.constant 0 : i32
    return %c0_i32, %c0_i32_0 : i32, i32
  }
  func.func @transform_5(%arg0: i32) -> (i32, i32) {
    %c0_i32 = arith.constant 0 : i32
    %c0_i32_0 = arith.constant 0 : i32
    return %arg0, %c0_i32 : i32, i32
  }
  func.func @transform_6(%arg0: i32) -> (i32, i32) {
    %c0_i32 = arith.constant 0 : i32
    %c0_i32_0 = arith.constant 0 : i32
    return %arg0, %c0_i32 : i32, i32
  }
}

module attributes {stable_mosaic.version = 11 : i64} {
  func.func @_kernel_with_attn(%arg0: i32, %arg1: memref<16x128xbf16, #tpu.memory_space<vmem>>, %arg2: memref<128x128xbf16, #tpu.memory_space<vmem>>, %arg3: memref<128x128xbf16, #tpu.memory_space<vmem>>, %arg4: memref<128x128xbf16, #tpu.memory_space<vmem>>, %arg5: memref<1x128xf32, #tpu.memory_space<vmem>>, %arg6: memref<16x128xf32, #tpu.memory_space<vmem>>, %arg7: memref<16x128xf32, #tpu.memory_space<vmem>>) attributes {dimension_semantics = [#tpu.dimension_semantics<parallel>], iteration_bounds = array<i64: 1>, scalar_prefetch = 0 : i64, scratch_operands = 0 : i64, tpu.core_type = #tpu.core_type<tc>, window_params = [{transform_indices = @transform_0, window_bounds = array<i64: 16, 128>}, {pipeline_mode = #tpu.pipeline_mode<synchronous>, transform_indices = @transform_1, window_bounds = array<i64: 128, 128>}, {pipeline_mode = #tpu.pipeline_mode<synchronous>, transform_indices = @transform_2, window_bounds = array<i64: 128, 128>}, {pipeline_mode = #tpu.pipeline_mode<synchronous>, transform_indices = @transform_3, window_bounds = array<i64: 128, 128>}, {pipeline_mode = #tpu.pipeline_mode<synchronous>, transform_indices = @transform_4, window_bounds = array<i64: 1, 128>}, {transform_indices = @transform_5, window_bounds = array<i64: 16, 128>}, {transform_indices = @transform_6, window_bounds = array<i64: 16, 128>}]} {
    %c0 = arith.constant 0 : index
    %c0_0 = arith.constant 0 : index
    %0 = vector.load %arg1[%c0, %c0_0] : memref<16x128xbf16, #tpu.memory_space<vmem>>, vector<16x128xbf16>
    %c0_1 = arith.constant 0 : index
    %c0_2 = arith.constant 0 : index
    %1 = vector.load %arg4[%c0_1, %c0_2] : memref<128x128xbf16, #tpu.memory_space<vmem>>, vector<128x128xbf16>
    %cst = arith.constant dense<0.000000e+00> : vector<16x128xf32>
    %2 = tpu.matmul %0, %1, %cst {dimension_numbers = #tpu.dot_dimension_numbers<[1], [0], [0], [1], [0, 0, 1, 1], [], []>} : vector<16x128xbf16>, vector<128x128xbf16>, vector<16x128xf32> -> vector<16x128xf32>
    %c0_3 = arith.constant 0 : index
    %c0_4 = arith.constant 0 : index
    %3 = vector.load %arg5[%c0_3, %c0_4] : memref<1x128xf32, #tpu.memory_space<vmem>>, vector<1x128xf32>
    %4 = vector.broadcast %3 : vector<1x128xf32> to vector<16x128xf32>
    %5 = arith.addf %2, %4 : vector<16x128xf32>
    %cst_5 = arith.constant 0.0883883461 : f32
    %6 = vector.broadcast %cst_5 : f32 to vector<16x128xf32>
    %7 = arith.mulf %5, %6 : vector<16x128xf32>
    %8 = arith.truncf %7 : vector<16x128xf32> to vector<16x128xbf16>
    %c0_6 = arith.constant 0 : index
    %c0_7 = arith.constant 0 : index
    %9 = vector.load %arg2[%c0_6, %c0_7] : memref<128x128xbf16, #tpu.memory_space<vmem>>, vector<128x128xbf16>
    %cst_8 = arith.constant dense<0.000000e+00> : vector<16x128xf32>
    %10 = tpu.matmul %8, %9, %cst_8 {dimension_numbers = #tpu.dot_dimension_numbers<[1], [0], [0], [1], [0, 0, 1, 1], [], []>} : vector<16x128xbf16>, vector<128x128xbf16>, vector<16x128xf32> -> vector<16x128xf32>
    %cst_9 = arith.constant dense<0xFF800000> : vector<16xf32>
    %11 = vector.multi_reduction <maximumf>, %10, %cst_9 [1] : vector<16x128xf32> to vector<16xf32>
    %12 = vector.shape_cast %11 : vector<16xf32> to vector<16x1xf32>
    %13 = vector.broadcast %12 : vector<16x1xf32> to vector<16x128xf32>
    %14 = arith.subf %10, %13 : vector<16x128xf32>
    %15 = math.exp %14 : vector<16x128xf32>
    %cst_10 = arith.constant dense<0.000000e+00> : vector<16xf32>
    %16 = vector.multi_reduction <add>, %15, %cst_10 [1] : vector<16x128xf32> to vector<16xf32>
    %17 = vector.shape_cast %16 : vector<16xf32> to vector<16x1xf32>
    %18 = tpu.reciprocal %17 {approx = true} : vector<16x1xf32> -> vector<16x1xf32>
    %19 = vector.broadcast %18 : vector<16x1xf32> to vector<16x128xf32>
    %20 = arith.mulf %15, %19 : vector<16x128xf32>
    %21 = arith.truncf %20 : vector<16x128xf32> to vector<16x128xbf16>
    %c0_11 = arith.constant 0 : index
    %c0_12 = arith.constant 0 : index
    %22 = vector.load %arg3[%c0_11, %c0_12] : memref<128x128xbf16, #tpu.memory_space<vmem>>, vector<128x128xbf16>
    %cst_13 = arith.constant dense<0.000000e+00> : vector<16x128xf32>
    %23 = tpu.matmul %21, %22, %cst_13 {dimension_numbers = #tpu.dot_dimension_numbers<[1], [0], [0], [1], [0, 0, 1, 1], [], []>} : vector<16x128xbf16>, vector<128x128xbf16>, vector<16x128xf32> -> vector<16x128xf32>
    %c0_14 = arith.constant 0 : index
    %c0_15 = arith.constant 0 : index
    %24 = vector.load %arg6[%c0_14, %c0_15] : memref<16x128xf32, #tpu.memory_space<vmem>>, vector<16x128xf32>
    tpu.vector_store %arg6[%c0_14, %c0_15], %23 {strides = array<i32>} : memref<16x128xf32, #tpu.memory_space<vmem>>, vector<16x128xf32>,
    %c0_16 = arith.constant 0 : index
    %c0_17 = arith.constant 0 : index
    %25 = vector.load %arg7[%c0_16, %c0_17] : memref<16x128xf32, #tpu.memory_space<vmem>>, vector<16x128xf32>
    tpu.vector_store %arg7[%c0_16, %c0_17], %20 {strides = array<i32>} : memref<16x128xf32, #tpu.memory_space<vmem>>, vector<16x128xf32>,
    return
  }
  func.func @transform_0(%arg0: i32) -> (i32, i32) {
    %c0_i32 = arith.constant 0 : i32
    %c0_i32_0 = arith.constant 0 : i32
    return %arg0, %c0_i32 : i32, i32
  }
  func.func @transform_1(%arg0: i32) -> (i32, i32) {
    %c0_i32 = arith.constant 0 : i32
    %c0_i32_0 = arith.constant 0 : i32
    %c0_i32_1 = arith.constant 0 : i32
    return %c0_i32, %c0_i32_0 : i32, i32
  }
  func.func @transform_2(%arg0: i32) -> (i32, i32) {
    %c0_i32 = arith.constant 0 : i32
    %c0_i32_0 = arith.constant 0 : i32
    %c0_i32_1 = arith.constant 0 : i32
    return %c0_i32, %c0_i32_0 : i32, i32
  }
  func.func @transform_3(%arg0: i32) -> (i32, i32) {
    %c0_i32 = arith.constant 0 : i32
    %c0_i32_0 = arith.constant 0 : i32
    %c0_i32_1 = arith.constant 0 : i32
    return %c0_i32, %c0_i32_0 : i32, i32
  }
  func.func @transform_4(%arg0: i32) -> (i32, i32) {
    %c0_i32 = arith.constant 0 : i32
    %c0_i32_0 = arith.constant 0 : i32
    %c0_i32_1 = arith.constant 0 : i32
    return %c0_i32, %c0_i32_0 : i32, i32
  }
  func.func @transform_5(%arg0: i32) -> (i32, i32) {
    %c0_i32 = arith.constant 0 : i32
    %c0_i32_0 = arith.constant 0 : i32
    return %arg0, %c0_i32 : i32, i32
  }
  func.func @transform_6(%arg0: i32) -> (i32, i32) {
    %c0_i32 = arith.constant 0 : i32
    %c0_i32_0 = arith.constant 0 : i32
    return %arg0, %c0_i32 : i32, i32
  }
}

</mosaic_0001>

<bundles_post_ra>
// kernel: tpu_custom_call.1
= control target key start
LH: loop header
LB: loop body
LE: loop exit
PB: predicated region body
PF: predicated region fallthrough
CT: control target
= control target key end

     0   :  { %12 = vsyncpa [#allocation3], 0  ;;  %s949_s0 = inlined_call_operand.hbm [shape: bf16[16,128], index: 0, kind: input, shape index: {}]   ;;  %s950_s1 = inlined_call_operand.hbm [shape: bf16[128,128], index: 1, kind: input, shape index: {}]   ;;  %s951_s2 = inlined_call_operand.hbm [shape: bf16[128,128], index: 2, kind: input, shape index: {}]   ;;  %s952_s3 = inlined_call_operand.hbm [shape: bf16[128,128], index: 3, kind: input, shape index: {}]   ;;  %s953_s4 = inlined_call_operand.vmem [shape: f32[1,128], index: 4, kind: input, shape index: {}]   ;;  %s954_s5 = inlined_call_operand.hbm [shape: f32[16,128], index: 5, kind: output, shape index: {0}]   ;;  %s955_s6 = inlined_call_operand.hbm [shape: f32[16,128], index: 6, kind: output, shape index: {1}]  }
   0x1   :  { %13 = vsyncpa [#allocation6], 0 }
   0x2   :  { %14 = vsyncpa [#allocation9], 0 }
   0x3   :  { %15 = vsyncpa [#allocation4], 0 }
   0x4   :  { %16 = vsyncpa [#allocation12], 0  ;;  %s771_s21 = smov [#allocation5]   ;;  %s772_s23 = smov [#allocation2]  }
   0x5   :  { %s34_s22 = sshll.u32 %s771_s21, 4  ;;  %s22_s24 = sshll.u32 %s772_s23, 4  ;;  %s35_s22 = int_to_ptr.vmem [resolvable:$true] %s34_s22  ;;  %s818_s24 = int_to_ptr.vmem [resolvable:$true] %s22_s24 }
   0x6   :  { %s629_s27 = scalar_lea.hbm %s950_s1, 1024 }
   0x7   :  { %p630_p0 = scmp.ne.s32.totalorder %s950_s1, %s629_s27  ;;  %p633_p1 = scmp.lt.u32.totalorder %s629_s27, %s950_s1 }
   0x9   :  { %p635_p2 = pnand %p633_p1, %p630_p0 }
   0xb   :  { %638 = shalt.err (!%p635_p2)
}
   0xc   :  { %s639_s8 = scalar_lea.vmem %s35_s22, 1024  ;;  %p644_p4 = scmp.lt.s32.totalorder %s35_s22, %s35_s22 }
   0xd   :  { %p640_p3 = scmp.ne.s32.totalorder %s35_s22, %s639_s8  ;;  %p645_p5 = scmp.lt.s32.totalorder %s639_s8, %s639_s8 }
   0xf   :  { %p646_p6 = por %p645_p5, %p644_p4 }
  0x11   :  { %p647_p7 = pnand %p646_p6, %p640_p3 }
  0x13   :  { %650 = shalt.err (!%p647_p7)
}
  0x14   :  { %s773_s9 = smov 64   ;;  %s774_s10 = smov 4  }
  0x15   :  { %40 = dma.hbm_to_vmem [thread:$0]  %s950_s1, 1024, %s35_s22, [#allocation6], %s773_s9, %s773_s9, %s774_s10  }
  0x16   :  { %s651_s15 = scalar_lea.hbm %s949_s0, 128 }
  0x17   :  { %p652_p8 = scmp.ne.s32.totalorder %s949_s0, %s651_s15  ;;  %p655_p9 = scmp.lt.u32.totalorder %s651_s15, %s949_s0 }
  0x19   :  { %p657_p10 = pnand %p655_p9, %p652_p8 }
  0x1b   :  { %660 = shalt.err (!%p657_p10)
}
  0x1c   :  { %s661_s20 = scalar_lea.vmem %s818_s24, 128  ;;  %p666_p12 = scmp.lt.s32.totalorder %s818_s24, %s818_s24 }
  0x1d   :  { %p662_p11 = scmp.ne.s32.totalorder %s818_s24, %s661_s20  ;;  %p667_p13 = scmp.lt.s32.totalorder %s661_s20, %s661_s20 }
  0x1f   :  { %p668_p0 = por %p667_p13, %p666_p12 }
  0x21   :  { %p669_p1 = pnand %p668_p0, %p662_p11 }
  0x23   :  { %672 = shalt.err (!%p669_p1)
}
  0x24   :  { %28 = dma.hbm_to_vmem [thread:$0]  %s949_s0, 128, %s818_s24, [#allocation3], %s773_s9, %s773_s9, %s774_s10  }
  0x25   :  { %s775_s22 = smov [#allocation7]   ;;  %s776_s25 = smov [#allocation8]  }
  0x26   :  { %s46_s23 = sshll.u32 %s775_s22, 4  ;;  %s58_s26 = sshll.u32 %s776_s25, 4  ;;  %s47_s23 = int_to_ptr.vmem [resolvable:$true] %s46_s23  ;;  %s855_s26 = int_to_ptr.vmem [resolvable:$true] %s58_s26 }
  0x27   :  { %s673_s29 = scalar_lea.hbm %s951_s2, 1024 }
  0x28   :  { %p674_p2 = scmp.ne.s32.totalorder %s951_s2, %s673_s29  ;;  %p677_p3 = scmp.lt.u32.totalorder %s673_s29, %s951_s2 }
  0x2a   :  { %p679_p4 = pnand %p677_p3, %p674_p2 }
  0x2c   :  { %682 = shalt.err (!%p679_p4)
}
  0x2d   :  { %s683_s0 = scalar_lea.vmem %s47_s23, 1024  ;;  %p688_p6 = scmp.lt.s32.totalorder %s47_s23, %s47_s23 }
  0x2e   :  { %p684_p5 = scmp.ne.s32.totalorder %s47_s23, %s683_s0  ;;  %p689_p7 = scmp.lt.s32.totalorder %s683_s0, %s683_s0 }
  0x30   :  { %p690_p8 = por %p689_p7, %p688_p6 }
  0x32   :  { %p691_p9 = pnand %p690_p8, %p684_p5 }
  0x34   :  { %694 = shalt.err (!%p691_p9)
}
  0x35   :  { %52 = dma.hbm_to_vmem [thread:$0]  %s951_s2, 1024, %s47_s23, [#allocation6], %s773_s9, %s773_s9, %s774_s10  }
  0x36   :  { %s695_s15 = scalar_lea.hbm %s952_s3, 1024 }
  0x37   :  { %p696_p10 = scmp.ne.s32.totalorder %s952_s3, %s695_s15  ;;  %p699_p11 = scmp.lt.u32.totalorder %s695_s15, %s952_s3 }
  0x39   :  { %p701_p12 = pnand %p699_p11, %p696_p10 }
  0x3b   :  { %704 = shalt.err (!%p701_p12)
}
  0x3c   :  { %s705_s20 = scalar_lea.vmem %s855_s26, 1024  ;;  %p710_p0 = scmp.lt.s32.totalorder %s855_s26, %s855_s26 }
  0x3d   :  { %p706_p13 = scmp.ne.s32.totalorder %s855_s26, %s705_s20  ;;  %p711_p1 = scmp.lt.s32.totalorder %s705_s20, %s705_s20 }
  0x3f   :  { %p712_p2 = por %p711_p1, %p710_p0 }
  0x41   :  { %p713_p3 = pnand %p712_p2, %p706_p13 }
  0x43   :  { %716 = shalt.err (!%p713_p3)
}
  0x44   :  { %64 = dma.hbm_to_vmem [thread:$0]  %s952_s3, 1024, %s855_s26, [#allocation9], %s773_s9, %s773_s9, %s774_s10  }
  0x45   :  { %761 = dma.done.wait [#allocation3], 128  }
  0x46   :  { %762 = vsyncadd [#allocation3], 4294967168 }
  0x47   :  { %763 = dma.done.wait [#allocation6], 2048  }
  0x48   :  { %764 = vsyncadd [#allocation6], 4294965248 }
  0x49   :  { %765 = dma.done.wait [#allocation9], 1024  }
  0x4a   :  { %766 = vsyncadd [#allocation9], 4294966272  ;;  %v777_v0 = vmov 0.0   ;;  %vm778_vm0 = vmmov 0   ;;  %v596_v1 = vld [vmem:[#allocation8] sm:$0xff]   ;;  %v597_v2 = vld [vmem:[#allocation8 + $0x8] sm:$0xff]  }
  0x4b   :  { %524 = vmatprep.subr.bf16.mxu0 %v777_v0  ;;  %540 = vmatprep.mubr.msk.bf16.mxu0 %vm778_vm0, %v777_v0  ;;  %v598_v3 = vld [vmem:[#allocation8 + $0x10] sm:$0xff]   ;;  %v605_v4 = vld [vmem:[#allocation5] sm:$0xff]   ;;  %v599_v5 = vld [vmem:[#allocation8 + $0x18] sm:$0xff]  }
  0x4c   :  { %544 = vmatprep.subr.bf16.mxu1 %v777_v0  ;;  %560 = vmatprep.mubr.msk.bf16.mxu1 %vm778_vm0, %v777_v0  ;;  %v606_v6 = vld [vmem:[#allocation5 + $0x8] sm:$0xff]   ;;  %v600_v7 = vld [vmem:[#allocation8 + $0x20] sm:$0xff]   ;;  %v607_v8 = vld [vmem:[#allocation5 + $0x10] sm:$0xff]  }
  0x4d   :  { %525 = vmatpush3.bf16.msra.mxu0 %v596_v1  ;;  %545 = vmatpush3.bf16.msra.mxu1 %v605_v4  ;;  %v601_v9 = vld [vmem:[#allocation8 + $0x28] sm:$0xff]   ;;  %v608_v10 = vld [vmem:[#allocation5 + $0x18] sm:$0xff]   ;;  %v602_v11 = vld [vmem:[#allocation8 + $0x30] sm:$0xff]  }
  0x4e   :  { %526 = vmatprep.subr.bf16.mxu0 %v777_v0  ;;  %546 = vmatprep.subr.bf16.mxu1 %v777_v0  ;;  %v609_v12 = vld [vmem:[#allocation5 + $0x20] sm:$0xff]   ;;  %v603_v13 = vld [vmem:[#allocation8 + $0x38] sm:$0xff]   ;;  %v610_v14 = vld [vmem:[#allocation5 + $0x28] sm:$0xff]  }
  0x4f   :  { %v604_v15 = vld [vmem:[#allocation2] sm:$0xff]   ;;  %v611_v16 = vld [vmem:[#allocation5 + $0x30] sm:$0xff]   ;;  %v613_v32 = vld [vmem:[#allocation7] sm:$0xff]  }
  0x50   :  { %v612_v17 = vld [vmem:[#allocation5 + $0x38] sm:$0xff]   ;;  %v614_v33 = vld [vmem:[#allocation7 + $0x8] sm:$0xff]   ;;  %v615_v34 = vld [vmem:[#allocation7 + $0x10] sm:$0xff]  }
  0x51   :  { %527 = vmatpush3.bf16.msra.mxu0 %v597_v2  ;;  %547 = vmatpush3.bf16.msra.mxu1 %v606_v6  ;;  %v471_v18 = vld [vmem:[%s953_s4] ss:$0 sm:$0xff]  ;;  %v617_v44 = vld [vmem:[#allocation7 + $0x20] sm:$0xff]   ;;  %v618_v45 = vld [vmem:[#allocation7 + $0x28] sm:$0xff]   ;;  %s779_s4 = smov [#allocation11]  }
  0x52   :  { %528 = vmatprep.subr.bf16.mxu0 %v777_v0  ;;  %548 = vmatprep.subr.bf16.mxu1 %v777_v0  ;;  %v616_v43 = vld [vmem:[#allocation7 + $0x18] sm:$0xff]   ;;  %v619_v46 = vld [vmem:[#allocation7 + $0x30] sm:$0xff]   ;;  %s453_s10 = sshll.u32 %s779_s4, 4  ;;  %s454_s10 = int_to_ptr.vmem [resolvable:$true] %s453_s10 }
  0x53   :  { %v620_v47 = vld [vmem:[#allocation7 + $0x38] sm:$0xff]   ;;  %s717_s21 = scalar_lea.vmem %s454_s10, 256  ;;  %p722_p5 = scmp.lt.s32.totalorder %s454_s10, %s454_s10 }
  0x54   :  { %p718_p4 = scmp.ne.s32.totalorder %s454_s10, %s717_s21  ;;  %p723_p6 = scmp.lt.s32.totalorder %s717_s21, %s717_s21 }
  0x55   :  { %529 = vmatpush3.bf16.msra.mxu0 %v598_v3  ;;  %549 = vmatpush3.bf16.msra.mxu1 %v607_v8 }
  0x56   :  { %530 = vmatprep.subr.bf16.mxu0 %v777_v0  ;;  %550 = vmatprep.subr.bf16.mxu1 %v777_v0  ;;  %p724_p7 = por %p723_p6, %p722_p5 }
  0x58   :  { %p725_p8 = pnand %p724_p7, %p718_p4 }
  0x59   :  { %531 = vmatpush3.bf16.msra.mxu0 %v599_v5  ;;  %551 = vmatpush3.bf16.msra.mxu1 %v608_v10 }
  0x5a   :  { %532 = vmatprep.subr.bf16.mxu0 %v777_v0  ;;  %552 = vmatprep.subr.bf16.mxu1 %v777_v0 }
  0x5d   :  { %533 = vmatpush3.bf16.msra.mxu0 %v600_v7  ;;  %553 = vmatpush3.bf16.msra.mxu1 %v609_v12 }
  0x5e   :  { %534 = vmatprep.subr.bf16.mxu0 %v777_v0  ;;  %554 = vmatprep.subr.bf16.mxu1 %v777_v0 }
  0x61   :  { %535 = vmatpush3.bf16.msra.mxu0 %v601_v9  ;;  %555 = vmatpush3.bf16.msra.mxu1 %v610_v14 }
  0x62   :  { %536 = vmatprep.subr.bf16.mxu0 %v777_v0  ;;  %556 = vmatprep.subr.bf16.mxu1 %v777_v0 }
  0x65   :  { %537 = vmatpush3.bf16.msra.mxu0 %v602_v11  ;;  %557 = vmatpush3.bf16.msra.mxu1 %v611_v16 }
  0x66   :  { %538 = vmatprep.subr.bf16.mxu0 %v777_v0  ;;  %558 = vmatprep.subr.bf16.mxu1 %v777_v0 }
  0x69   :  { %539 = vmatpush3.bf16.msra.mxu0 %v603_v13  ;;  %559 = vmatpush3.bf16.msra.mxu1 %v612_v17 }
  0x6a   :  { %564 = vmatprep.subr.bf16.mxu0 %v777_v0 }
  0x6c   :  { %541 = vmatmul.mubr.bf16.vlgmr.msra.gmra.mrb[0].mxu0 %v604_v15 }
  0x6d   :  { %580 = vmatprep.mubr.msk.bf16.mxu0 %vm778_vm0, %v777_v0  ;;  %565 = vmatpush3.bf16.msra.mxu0 %v613_v32 }
  0x6e   :  { %566 = vmatprep.subr.bf16.mxu0 %v777_v0 }
  0x71   :  { %567 = vmatpush3.bf16.msra.mxu0 %v614_v33 }
  0x72   :  { %568 = vmatprep.subr.bf16.mxu0 %v777_v0 }
  0x75   :  { %569 = vmatpush3.bf16.msra.mxu0 %v615_v34 }
  0x76   :  { %570 = vmatprep.subr.bf16.mxu0 %v777_v0 }
  0x79   :  { %571 = vmatpush3.bf16.msra.mxu0 %v616_v43 }
  0x7a   :  { %572 = vmatprep.subr.bf16.mxu0 %v777_v0 }
  0x7d   :  { %573 = vmatpush3.bf16.msra.mxu0 %v617_v44 }
  0x7e   :  { %574 = vmatprep.subr.bf16.mxu0 %v777_v0 }
  0x81   :  { %575 = vmatpush3.bf16.msra.mxu0 %v618_v45 }
  0x82   :  { %576 = vmatprep.subr.bf16.mxu0 %v777_v0 }
  0x85   :  { %577 = vmatpush3.bf16.msra.mxu0 %v619_v46 }
  0x86   :  { %578 = vmatprep.subr.bf16.mxu0 %v777_v0 }
  0x89   :  { %579 = vmatpush3.bf16.msra.mxu0 %v620_v47 }
 0x13f   :  { %v193_v19 = vpop.f32.mrb[0].mxu0 }
 0x140   :  { %v194_v20 = vadd.f32 %v471_v18, %v193_v19  ;;  %v542_v21 = vpop.f32.mrb[1].mxu0 }
 0x141   :  { %v196_v22 = vpop.f32.mrb[2].mxu0 }
 0x142   :  { %v197_v23 = vadd.f32 %v471_v18, %v196_v22  ;;  %v543_v24 = vpop.f32.mrb[3].mxu0  ;;  %v200_v25 = vmul.f32 0.088388346, %v194_v20 }
 0x144   :  { %v201_v26 = vmul.f32 0.088388346, %v197_v23 }
 0x146   :  { %v202_v27 = vpack.c.bf16 %v201_v26, %v200_v25 }
 0x148   :  { %561 = vmatmul.mubr.bf16.vlgmr.msra.gmra.mrb[0].mxu1 %v202_v27 }
 0x21b   :  { %v301_v28 = vpop.f32.mrb[0].mxu1 }
 0x21c   :  { %308 = vmax.xlane.f32.xlu0 %v301_v28  ;;  %v562_v29 = vpop.f32.mrb[1].mxu1 }
 0x21d   :  { %v304_v30 = vpop.f32.mrb[2].mxu1 }
 0x21e   :  { %v563_v31 = vpop.f32.mrb[3].mxu1 }
 0x220   :  { %310 = vmax.xlane.f32.xlu0 %v304_v30 }
 0x2a9   :  { %v309_v35 = vpop.xlane.xlu0 %308 }
 0x2aa   :  { %v312_v36 = vsub.f32 %v301_v28, %v309_v35 }
 0x2ac   :  { %v314_v37 = vmul.f32 1.442695, %v312_v36 }
 0x2ad   :  { %v311_v38 = vpop.xlane.xlu0 %310 }
 0x2ae   :  { %621 = vpow2.f32 %v314_v37  ;;  %v313_v39 = vsub.f32 %v304_v30, %v311_v38 }
 0x2b0   :  { %v316_v40 = vmul.f32 1.442695, %v313_v39 }
 0x2b2   :  { %623 = vpow2.f32 %v316_v40 }
 0x2b8   :  { %v622_v41 = vpop.eup %621 }
 0x2b9   :  { %318 = vadd.xlane.f32.xlu1 %v622_v41 }
 0x2bc   :  { %v624_v42 = vpop.eup %623 }
 0x2bd   :  { %320 = vadd.xlane.f32.xlu1 %v624_v42 }
 0x346   :  { %v319_v48 = vpop.xlane.xlu1 %318 }
 0x347   :  { %625 = vrcp.f32 %v319_v48 }
 0x34a   :  { %v321_v49 = vpop.xlane.xlu1 %320 }
 0x34b   :  { %627 = vrcp.f32 %v321_v49 }
 0x351   :  { %v626_v50 = vpop.eup %625 }
 0x352   :  { %v324_v51 = vmul.f32 %v626_v50, %v622_v41 }
 0x354   :  { %434 = vst [vmem:[#allocation11] sm:$0xff] %v324_v51 }
 0x355   :  { %v628_v52 = vpop.eup %627 }
 0x356   :  { %v325_v53 = vmul.f32 %v628_v52, %v624_v42 }
 0x358   :  { %v326_v54 = vpack.c.bf16 %v325_v53, %v324_v51  ;;  %435 = vst [vmem:[#allocation11 + $0x8] sm:$0xff] %v325_v53 }
 0x35a   :  { %581 = vmatmul.mubr.bf16.vlgmr.msra.gmra.mrb[4].mxu0 %v326_v54 }
 0x35b   :  { %728 = shalt.err (!%p725_p8)
}
 0x35c   :  { %s729_s25 = scalar_lea.hbm %s955_s6, 256 }
 0x35d   :  { %p730_p9 = scmp.ne.s32.totalorder %s955_s6, %s729_s25  ;;  %p733_p10 = scmp.lt.u32.totalorder %s729_s25, %s955_s6 }
 0x35f   :  { %p735_p11 = pnand %p733_p10, %p730_p9 }
 0x361   :  { %738 = shalt.err (!%p735_p11)
}
 0x362   :  { %s780_s30 = smov 128   ;;  %s781_s7 = smov 8  }
 0x363   :  { %459 = dma.vmem_to_hbm [thread:$0]  %s454_s10, 256, %s955_s6, [#allocation12], %s780_s30, %s780_s30, %s781_s7  }
 0x364   :  { %s782_s0 = smov [#allocation10]  }
 0x365   :  { %s441_s24 = sshll.u32 %s782_s0, 4  ;;  %s442_s24 = int_to_ptr.vmem [resolvable:$true] %s441_s24 }
 0x366   :  { %s739_s12 = scalar_lea.vmem %s442_s24, 256  ;;  %p744_p13 = scmp.lt.s32.totalorder %s442_s24, %s442_s24 }
 0x367   :  { %p740_p12 = scmp.ne.s32.totalorder %s442_s24, %s739_s12  ;;  %p745_p0 = scmp.lt.s32.totalorder %s739_s12, %s739_s12 }
 0x369   :  { %p746_p1 = por %p745_p0, %p744_p13 }
 0x36b   :  { %p747_p2 = pnand %p746_p1, %p740_p12 }
 0x42d   :  { %v425_v55 = vpop.f32.mrb[4].mxu0 }
 0x42e   :  { %432 = vst [vmem:[#allocation10] sm:$0xff] %v425_v55  ;;  %v582_v56 = vpop.f32.mrb[5].mxu0 }
 0x42f   :  { %v428_v57 = vpop.f32.mrb[6].mxu0 }
 0x430   :  { %433 = vst [vmem:[#allocation10 + $0x8] sm:$0xff] %v428_v57  ;;  %v583_v58 = vpop.f32.mrb[7].mxu0 }
 0x431   :  { %750 = shalt.err (!%p747_p2)
}
 0x432   :  { %s751_s6 = scalar_lea.hbm %s954_s5, 256 }
 0x433   :  { %p752_p3 = scmp.ne.s32.totalorder %s954_s5, %s751_s6  ;;  %p755_p4 = scmp.lt.u32.totalorder %s751_s6, %s954_s5 }
 0x435   :  { %p757_p5 = pnand %p755_p4, %p752_p3 }
 0x437   :  { %760 = shalt.err (!%p757_p5)
}
 0x438   :  { %447 = dma.vmem_to_hbm [thread:$0]  %s442_s24, 256, %s954_s5, [#allocation4], %s780_s30, %s780_s30, %s781_s7  }
 0x439   :  { %767 = dma.done.wait [#allocation4], 256  }
 0x43a   :  { %768 = vsyncadd [#allocation4], 4294967040 }
 0x43b   :  { %769 = dma.done.wait [#allocation12], 256  }
 0x43c   :  { %770 = vsyncadd [#allocation12], 4294967040 }
 0x43d   :  { %466 = vsyncpa [#allocation3], 1 }
 0x43e   :  { %467 = vsyncpa [#allocation6], 1 }
 0x43f   :  { %468 = vsyncpa [#allocation9], 1 }
 0x440   :  { %469 = vsyncpa [#allocation4], 1 }
 0x441   :  { %470 = vsyncpa [#allocation12], 1 }

// kernel: tpu_custom_call.1
= control target key start
LH: loop header
LB: loop body
LE: loop exit
PB: predicated region body
PF: predicated region fallthrough
CT: control target
= control target key end

     0   :  { %12 = vsyncpa [#allocation3], 0  ;;  %s949_s0 = inlined_call_operand.hbm [shape: bf16[16,128], index: 0, kind: input, shape index: {}]   ;;  %s950_s1 = inlined_call_operand.hbm [shape: bf16[128,128], index: 1, kind: input, shape index: {}]   ;;  %s951_s2 = inlined_call_operand.hbm [shape: bf16[128,128], index: 2, kind: input, shape index: {}]   ;;  %s952_s3 = inlined_call_operand.hbm [shape: bf16[128,128], index: 3, kind: input, shape index: {}]   ;;  %s953_s4 = inlined_call_operand.vmem [shape: f32[1,128], index: 4, kind: input, shape index: {}]   ;;  %s954_s5 = inlined_call_operand.hbm [shape: f32[16,128], index: 5, kind: output, shape index: {0}]   ;;  %s955_s6 = inlined_call_operand.hbm [shape: f32[16,128], index: 6, kind: output, shape index: {1}]  }
   0x1   :  { %13 = vsyncpa [#allocation6], 0 }
   0x2   :  { %14 = vsyncpa [#allocation9], 0 }
   0x3   :  { %15 = vsyncpa [#allocation4], 0 }
   0x4   :  { %16 = vsyncpa [#allocation12], 0  ;;  %s771_s21 = smov [#allocation5]   ;;  %s772_s23 = smov [#allocation2]  }
   0x5   :  { %s34_s22 = sshll.u32 %s771_s21, 4  ;;  %s22_s24 = sshll.u32 %s772_s23, 4  ;;  %s35_s22 = int_to_ptr.vmem [resolvable:$true] %s34_s22  ;;  %s818_s24 = int_to_ptr.vmem [resolvable:$true] %s22_s24 }
   0x6   :  { %s629_s27 = scalar_lea.hbm %s950_s1, 1024 }
   0x7   :  { %p630_p0 = scmp.ne.s32.totalorder %s950_s1, %s629_s27  ;;  %p633_p1 = scmp.lt.u32.totalorder %s629_s27, %s950_s1 }
   0x9   :  { %p635_p2 = pnand %p633_p1, %p630_p0 }
   0xb   :  { %638 = shalt.err (!%p635_p2)
}
   0xc   :  { %s639_s8 = scalar_lea.vmem %s35_s22, 1024  ;;  %p644_p4 = scmp.lt.s32.totalorder %s35_s22, %s35_s22 }
   0xd   :  { %p640_p3 = scmp.ne.s32.totalorder %s35_s22, %s639_s8  ;;  %p645_p5 = scmp.lt.s32.totalorder %s639_s8, %s639_s8 }
   0xf   :  { %p646_p6 = por %p645_p5, %p644_p4 }
  0x11   :  { %p647_p7 = pnand %p646_p6, %p640_p3 }
  0x13   :  { %650 = shalt.err (!%p647_p7)
}
  0x14   :  { %s773_s9 = smov 64   ;;  %s774_s10 = smov 4  }
  0x15   :  { %40 = dma.hbm_to_vmem [thread:$0]  %s950_s1, 1024, %s35_s22, [#allocation6], %s773_s9, %s773_s9, %s774_s10  }
  0x16   :  { %s651_s15 = scalar_lea.hbm %s949_s0, 128 }
  0x17   :  { %p652_p8 = scmp.ne.s32.totalorder %s949_s0, %s651_s15  ;;  %p655_p9 = scmp.lt.u32.totalorder %s651_s15, %s949_s0 }
  0x19   :  { %p657_p10 = pnand %p655_p9, %p652_p8 }
  0x1b   :  { %660 = shalt.err (!%p657_p10)
}
  0x1c   :  { %s661_s20 = scalar_lea.vmem %s818_s24, 128  ;;  %p666_p12 = scmp.lt.s32.totalorder %s818_s24, %s818_s24 }
  0x1d   :  { %p662_p11 = scmp.ne.s32.totalorder %s818_s24, %s661_s20  ;;  %p667_p13 = scmp.lt.s32.totalorder %s661_s20, %s661_s20 }
  0x1f   :  { %p668_p0 = por %p667_p13, %p666_p12 }
  0x21   :  { %p669_p1 = pnand %p668_p0, %p662_p11 }
  0x23   :  { %672 = shalt.err (!%p669_p1)
}
  0x24   :  { %28 = dma.hbm_to_vmem [thread:$0]  %s949_s0, 128, %s818_s24, [#allocation3], %s773_s9, %s773_s9, %s774_s10  }
  0x25   :  { %s775_s22 = smov [#allocation7]   ;;  %s776_s25 = smov [#allocation8]  }
  0x26   :  { %s46_s23 = sshll.u32 %s775_s22, 4  ;;  %s58_s26 = sshll.u32 %s776_s25, 4  ;;  %s47_s23 = int_to_ptr.vmem [resolvable:$true] %s46_s23  ;;  %s855_s26 = int_to_ptr.vmem [resolvable:$true] %s58_s26 }
  0x27   :  { %s673_s29 = scalar_lea.hbm %s951_s2, 1024 }
  0x28   :  { %p674_p2 = scmp.ne.s32.totalorder %s951_s2, %s673_s29  ;;  %p677_p3 = scmp.lt.u32.totalorder %s673_s29, %s951_s2 }
  0x2a   :  { %p679_p4 = pnand %p677_p3, %p674_p2 }
  0x2c   :  { %682 = shalt.err (!%p679_p4)
}
  0x2d   :  { %s683_s0 = scalar_lea.vmem %s47_s23, 1024  ;;  %p688_p6 = scmp.lt.s32.totalorder %s47_s23, %s47_s23 }
  0x2e   :  { %p684_p5 = scmp.ne.s32.totalorder %s47_s23, %s683_s0  ;;  %p689_p7 = scmp.lt.s32.totalorder %s683_s0, %s683_s0 }
  0x30   :  { %p690_p8 = por %p689_p7, %p688_p6 }
  0x32   :  { %p691_p9 = pnand %p690_p8, %p684_p5 }
  0x34   :  { %694 = shalt.err (!%p691_p9)
}
  0x35   :  { %52 = dma.hbm_to_vmem [thread:$0]  %s951_s2, 1024, %s47_s23, [#allocation6], %s773_s9, %s773_s9, %s774_s10  }
  0x36   :  { %s695_s15 = scalar_lea.hbm %s952_s3, 1024 }
  0x37   :  { %p696_p10 = scmp.ne.s32.totalorder %s952_s3, %s695_s15  ;;  %p699_p11 = scmp.lt.u32.totalorder %s695_s15, %s952_s3 }
  0x39   :  { %p701_p12 = pnand %p699_p11, %p696_p10 }
  0x3b   :  { %704 = shalt.err (!%p701_p12)
}
  0x3c   :  { %s705_s20 = scalar_lea.vmem %s855_s26, 1024  ;;  %p710_p0 = scmp.lt.s32.totalorder %s855_s26, %s855_s26 }
  0x3d   :  { %p706_p13 = scmp.ne.s32.totalorder %s855_s26, %s705_s20  ;;  %p711_p1 = scmp.lt.s32.totalorder %s705_s20, %s705_s20 }
  0x3f   :  { %p712_p2 = por %p711_p1, %p710_p0 }
  0x41   :  { %p713_p3 = pnand %p712_p2, %p706_p13 }
  0x43   :  { %716 = shalt.err (!%p713_p3)
}
  0x44   :  { %64 = dma.hbm_to_vmem [thread:$0]  %s952_s3, 1024, %s855_s26, [#allocation9], %s773_s9, %s773_s9, %s774_s10  }
  0x45   :  { %761 = dma.done.wait [#allocation3], 128  }
  0x46   :  { %762 = vsyncadd [#allocation3], 4294967168 }
  0x47   :  { %763 = dma.done.wait [#allocation6], 2048  }
  0x48   :  { %764 = vsyncadd [#allocation6], 4294965248 }
  0x49   :  { %765 = dma.done.wait [#allocation9], 1024  }
  0x4a   :  { %766 = vsyncadd [#allocation9], 4294966272  ;;  %v777_v0 = vmov 0.0   ;;  %vm778_vm0 = vmmov 0   ;;  %v596_v1 = vld [vmem:[#allocation8] sm:$0xff]   ;;  %v597_v2 = vld [vmem:[#allocation8 + $0x8] sm:$0xff]  }
  0x4b   :  { %524 = vmatprep.subr.bf16.mxu0 %v777_v0  ;;  %540 = vmatprep.mubr.msk.bf16.mxu0 %vm778_vm0, %v777_v0  ;;  %v598_v3 = vld [vmem:[#allocation8 + $0x10] sm:$0xff]   ;;  %v605_v4 = vld [vmem:[#allocation5] sm:$0xff]   ;;  %v599_v5 = vld [vmem:[#allocation8 + $0x18] sm:$0xff]  }
  0x4c   :  { %544 = vmatprep.subr.bf16.mxu1 %v777_v0  ;;  %560 = vmatprep.mubr.msk.bf16.mxu1 %vm778_vm0, %v777_v0  ;;  %v606_v6 = vld [vmem:[#allocation5 + $0x8] sm:$0xff]   ;;  %v600_v7 = vld [vmem:[#allocation8 + $0x20] sm:$0xff]   ;;  %v607_v8 = vld [vmem:[#allocation5 + $0x10] sm:$0xff]  }
  0x4d   :  { %525 = vmatpush3.bf16.msra.mxu0 %v596_v1  ;;  %545 = vmatpush3.bf16.msra.mxu1 %v605_v4  ;;  %v601_v9 = vld [vmem:[#allocation8 + $0x28] sm:$0xff]   ;;  %v608_v10 = vld [vmem:[#allocation5 + $0x18] sm:$0xff]   ;;  %v602_v11 = vld [vmem:[#allocation8 + $0x30] sm:$0xff]  }
  0x4e   :  { %526 = vmatprep.subr.bf16.mxu0 %v777_v0  ;;  %546 = vmatprep.subr.bf16.mxu1 %v777_v0  ;;  %v609_v12 = vld [vmem:[#allocation5 + $0x20] sm:$0xff]   ;;  %v603_v13 = vld [vmem:[#allocation8 + $0x38] sm:$0xff]   ;;  %v610_v14 = vld [vmem:[#allocation5 + $0x28] sm:$0xff]  }
  0x4f   :  { %v604_v15 = vld [vmem:[#allocation2] sm:$0xff]   ;;  %v611_v16 = vld [vmem:[#allocation5 + $0x30] sm:$0xff]   ;;  %v613_v32 = vld [vmem:[#allocation7] sm:$0xff]  }
  0x50   :  { %v612_v17 = vld [vmem:[#allocation5 + $0x38] sm:$0xff]   ;;  %v614_v33 = vld [vmem:[#allocation7 + $0x8] sm:$0xff]   ;;  %v615_v34 = vld [vmem:[#allocation7 + $0x10] sm:$0xff]  }
  0x51   :  { %527 = vmatpush3.bf16.msra.mxu0 %v597_v2  ;;  %547 = vmatpush3.bf16.msra.mxu1 %v606_v6  ;;  %v471_v18 = vld [vmem:[%s953_s4] ss:$0 sm:$0xff]  ;;  %v617_v44 = vld [vmem:[#allocation7 + $0x20] sm:$0xff]   ;;  %v618_v45 = vld [vmem:[#allocation7 + $0x28] sm:$0xff]   ;;  %s779_s4 = smov [#allocation11]  }
  0x52   :  { %528 = vmatprep.subr.bf16.mxu0 %v777_v0  ;;  %548 = vmatprep.subr.bf16.mxu1 %v777_v0  ;;  %v616_v43 = vld [vmem:[#allocation7 + $0x18] sm:$0xff]   ;;  %v619_v46 = vld [vmem:[#allocation7 + $0x30] sm:$0xff]   ;;  %s453_s10 = sshll.u32 %s779_s4, 4  ;;  %s454_s10 = int_to_ptr.vmem [resolvable:$true] %s453_s10 }
  0x53   :  { %v620_v47 = vld [vmem:[#allocation7 + $0x38] sm:$0xff]   ;;  %s717_s21 = scalar_lea.vmem %s454_s10, 256  ;;  %p722_p5 = scmp.lt.s32.totalorder %s454_s10, %s454_s10 }
  0x54   :  { %p718_p4 = scmp.ne.s32.totalorder %s454_s10, %s717_s21  ;;  %p723_p6 = scmp.lt.s32.totalorder %s717_s21, %s717_s21 }
  0x55   :  { %529 = vmatpush3.bf16.msra.mxu0 %v598_v3  ;;  %549 = vmatpush3.bf16.msra.mxu1 %v607_v8 }
  0x56   :  { %530 = vmatprep.subr.bf16.mxu0 %v777_v0  ;;  %550 = vmatprep.subr.bf16.mxu1 %v777_v0  ;;  %p724_p7 = por %p723_p6, %p722_p5 }
  0x58   :  { %p725_p8 = pnand %p724_p7, %p718_p4 }
  0x59   :  { %531 = vmatpush3.bf16.msra.mxu0 %v599_v5  ;;  %551 = vmatpush3.bf16.msra.mxu1 %v608_v10 }
  0x5a   :  { %532 = vmatprep.subr.bf16.mxu0 %v777_v0  ;;  %552 = vmatprep.subr.bf16.mxu1 %v777_v0 }
  0x5d   :  { %533 = vmatpush3.bf16.msra.mxu0 %v600_v7  ;;  %553 = vmatpush3.bf16.msra.mxu1 %v609_v12 }
  0x5e   :  { %534 = vmatprep.subr.bf16.mxu0 %v777_v0  ;;  %554 = vmatprep.subr.bf16.mxu1 %v777_v0 }
  0x61   :  { %535 = vmatpush3.bf16.msra.mxu0 %v601_v9  ;;  %555 = vmatpush3.bf16.msra.mxu1 %v610_v14 }
  0x62   :  { %536 = vmatprep.subr.bf16.mxu0 %v777_v0  ;;  %556 = vmatprep.subr.bf16.mxu1 %v777_v0 }
  0x65   :  { %537 = vmatpush3.bf16.msra.mxu0 %v602_v11  ;;  %557 = vmatpush3.bf16.msra.mxu1 %v611_v16 }
  0x66   :  { %538 = vmatprep.subr.bf16.mxu0 %v777_v0  ;;  %558 = vmatprep.subr.bf16.mxu1 %v777_v0 }
  0x69   :  { %539 = vmatpush3.bf16.msra.mxu0 %v603_v13  ;;  %559 = vmatpush3.bf16.msra.mxu1 %v612_v17 }
  0x6a   :  { %564 = vmatprep.subr.bf16.mxu0 %v777_v0 }
  0x6c   :  { %541 = vmatmul.mubr.bf16.vlgmr.msra.gmra.mrb[0].mxu0 %v604_v15 }
  0x6d   :  { %580 = vmatprep.mubr.msk.bf16.mxu0 %vm778_vm0, %v777_v0  ;;  %565 = vmatpush3.bf16.msra.mxu0 %v613_v32 }
  0x6e   :  { %566 = vmatprep.subr.bf16.mxu0 %v777_v0 }
  0x71   :  { %567 = vmatpush3.bf16.msra.mxu0 %v614_v33 }
  0x72   :  { %568 = vmatprep.subr.bf16.mxu0 %v777_v0 }
  0x75   :  { %569 = vmatpush3.bf16.msra.mxu0 %v615_v34 }
  0x76   :  { %570 = vmatprep.subr.bf16.mxu0 %v777_v0 }
  0x79   :  { %571 = vmatpush3.bf16.msra.mxu0 %v616_v43 }
  0x7a   :  { %572 = vmatprep.subr.bf16.mxu0 %v777_v0 }
  0x7d   :  { %573 = vmatpush3.bf16.msra.mxu0 %v617_v44 }
  0x7e   :  { %574 = vmatprep.subr.bf16.mxu0 %v777_v0 }
  0x81   :  { %575 = vmatpush3.bf16.msra.mxu0 %v618_v45 }
  0x82   :  { %576 = vmatprep.subr.bf16.mxu0 %v777_v0 }
  0x85   :  { %577 = vmatpush3.bf16.msra.mxu0 %v619_v46 }
  0x86   :  { %578 = vmatprep.subr.bf16.mxu0 %v777_v0 }
  0x89   :  { %579 = vmatpush3.bf16.msra.mxu0 %v620_v47 }
 0x13f   :  { %v193_v19 = vpop.f32.mrb[0].mxu0 }
 0x140   :  { %v194_v20 = vadd.f32 %v471_v18, %v193_v19  ;;  %v542_v21 = vpop.f32.mrb[1].mxu0 }
 0x141   :  { %v196_v22 = vpop.f32.mrb[2].mxu0 }
 0x142   :  { %v197_v23 = vadd.f32 %v471_v18, %v196_v22  ;;  %v543_v24 = vpop.f32.mrb[3].mxu0  ;;  %v200_v25 = vmul.f32 0.088388346, %v194_v20 }
 0x144   :  { %v201_v26 = vmul.f32 0.088388346, %v197_v23 }
 0x146   :  { %v202_v27 = vpack.c.bf16 %v201_v26, %v200_v25 }
 0x148   :  { %561 = vmatmul.mubr.bf16.vlgmr.msra.gmra.mrb[0].mxu1 %v202_v27 }
 0x21b   :  { %v301_v28 = vpop.f32.mrb[0].mxu1 }
 0x21c   :  { %308 = vmax.xlane.f32.xlu0 %v301_v28  ;;  %v562_v29 = vpop.f32.mrb[1].mxu1 }
 0x21d   :  { %v304_v30 = vpop.f32.mrb[2].mxu1 }
 0x21e   :  { %v563_v31 = vpop.f32.mrb[3].mxu1 }
 0x220   :  { %310 = vmax.xlane.f32.xlu0 %v304_v30 }
 0x2a9   :  { %v309_v35 = vpop.xlane.xlu0 %308 }
 0x2aa   :  { %v312_v36 = vsub.f32 %v301_v28, %v309_v35 }
 0x2ac   :  { %v314_v37 = vmul.f32 1.442695, %v312_v36 }
 0x2ad   :  { %v311_v38 = vpop.xlane.xlu0 %310 }
 0x2ae   :  { %621 = vpow2.f32 %v314_v37  ;;  %v313_v39 = vsub.f32 %v304_v30, %v311_v38 }
 0x2b0   :  { %v316_v40 = vmul.f32 1.442695, %v313_v39 }
 0x2b2   :  { %623 = vpow2.f32 %v316_v40 }
 0x2b8   :  { %v622_v41 = vpop.eup %621 }
 0x2b9   :  { %318 = vadd.xlane.f32.xlu1 %v622_v41 }
 0x2bc   :  { %v624_v42 = vpop.eup %623 }
 0x2bd   :  { %320 = vadd.xlane.f32.xlu1 %v624_v42 }
 0x346   :  { %v319_v48 = vpop.xlane.xlu1 %318 }
 0x347   :  { %625 = vrcp.f32 %v319_v48 }
 0x34a   :  { %v321_v49 = vpop.xlane.xlu1 %320 }
 0x34b   :  { %627 = vrcp.f32 %v321_v49 }
 0x351   :  { %v626_v50 = vpop.eup %625 }
 0x352   :  { %v324_v51 = vmul.f32 %v626_v50, %v622_v41 }
 0x354   :  { %434 = vst [vmem:[#allocation11] sm:$0xff] %v324_v51 }
 0x355   :  { %v628_v52 = vpop.eup %627 }
 0x356   :  { %v325_v53 = vmul.f32 %v628_v52, %v624_v42 }
 0x358   :  { %v326_v54 = vpack.c.bf16 %v325_v53, %v324_v51  ;;  %435 = vst [vmem:[#allocation11 + $0x8] sm:$0xff] %v325_v53 }
 0x35a   :  { %581 = vmatmul.mubr.bf16.vlgmr.msra.gmra.mrb[4].mxu0 %v326_v54 }
 0x35b   :  { %728 = shalt.err (!%p725_p8)
}
 0x35c   :  { %s729_s25 = scalar_lea.hbm %s955_s6, 256 }
 0x35d   :  { %p730_p9 = scmp.ne.s32.totalorder %s955_s6, %s729_s25  ;;  %p733_p10 = scmp.lt.u32.totalorder %s729_s25, %s955_s6 }
 0x35f   :  { %p735_p11 = pnand %p733_p10, %p730_p9 }
 0x361   :  { %738 = shalt.err (!%p735_p11)
}
 0x362   :  { %s780_s30 = smov 128   ;;  %s781_s7 = smov 8  }
 0x363   :  { %459 = dma.vmem_to_hbm [thread:$0]  %s454_s10, 256, %s955_s6, [#allocation12], %s780_s30, %s780_s30, %s781_s7  }
 0x364   :  { %s782_s0 = smov [#allocation10]  }
 0x365   :  { %s441_s24 = sshll.u32 %s782_s0, 4  ;;  %s442_s24 = int_to_ptr.vmem [resolvable:$true] %s441_s24 }
 0x366   :  { %s739_s12 = scalar_lea.vmem %s442_s24, 256  ;;  %p744_p13 = scmp.lt.s32.totalorder %s442_s24, %s442_s24 }
 0x367   :  { %p740_p12 = scmp.ne.s32.totalorder %s442_s24, %s739_s12  ;;  %p745_p0 = scmp.lt.s32.totalorder %s739_s12, %s739_s12 }
 0x369   :  { %p746_p1 = por %p745_p0, %p744_p13 }
 0x36b   :  { %p747_p2 = pnand %p746_p1, %p740_p12 }
 0x42d   :  { %v425_v55 = vpop.f32.mrb[4].mxu0 }
 0x42e   :  { %432 = vst [vmem:[#allocation10] sm:$0xff] %v425_v55  ;;  %v582_v56 = vpop.f32.mrb[5].mxu0 }
 0x42f   :  { %v428_v57 = vpop.f32.mrb[6].mxu0 }
 0x430   :  { %433 = vst [vmem:[#allocation10 + $0x8] sm:$0xff] %v428_v57  ;;  %v583_v58 = vpop.f32.mrb[7].mxu0 }
 0x431   :  { %750 = shalt.err (!%p747_p2)
}
 0x432   :  { %s751_s6 = scalar_lea.hbm %s954_s5, 256 }
 0x433   :  { %p752_p3 = scmp.ne.s32.totalorder %s954_s5, %s751_s6  ;;  %p755_p4 = scmp.lt.u32.totalorder %s751_s6, %s954_s5 }
 0x435   :  { %p757_p5 = pnand %p755_p4, %p752_p3 }
 0x437   :  { %760 = shalt.err (!%p757_p5)
}
 0x438   :  { %447 = dma.vmem_to_hbm [thread:$0]  %s442_s24, 256, %s954_s5, [#allocation4], %s780_s30, %s780_s30, %s781_s7  }
 0x439   :  { %767 = dma.done.wait [#allocation4], 256  }
 0x43a   :  { %768 = vsyncadd [#allocation4], 4294967040 }
 0x43b   :  { %769 = dma.done.wait [#allocation12], 256  }
 0x43c   :  { %770 = vsyncadd [#allocation12], 4294967040 }
 0x43d   :  { %466 = vsyncpa [#allocation3], 1 }
 0x43e   :  { %467 = vsyncpa [#allocation6], 1 }
 0x43f   :  { %468 = vsyncpa [#allocation9], 1 }
 0x440   :  { %469 = vsyncpa [#allocation4], 1 }
 0x441   :  { %470 = vsyncpa [#allocation12], 1 }

</bundles_post_ra>
